<compile_context>
chip_gen: v7x
topology: tpu7x:2x2x1
jax: 0.10.0
libtpu: 0.0.40
codegen_flags: <defaults>
</compile_context>

<pallas_src>
import functools
from collections import defaultdict

import jax
import jax.numpy as jnp
from jax import lax
from jax.experimental import pallas as pl
from jax.experimental.pallas import tpu as pltpu


def _round_up(x, m):
    return (x + m - 1) // m * m


def _choose_tile_hw(hw, batch, desired=2048):
    """Pixel-tile size: as large as possible (amortize ~0.35us/grid-step, sit on
    the HBM-roofline plateau) while preferring an even total step count >= 4 so
    v7x's two TensorCores split the (batch, tiles) grid evenly."""
    desired = max(int(desired), 128)
    if hw <= 128:
        return hw                       # single full-width block (full-dim block is legal)
    cands = [t for t in (4096, 2048, 1024, 512, 256, 128) if t <= min(desired, hw)]
    if not cands:
        cands = [128]
    for t in cands:                     # best: even number of total steps, >= 4
        n = batch * (-(-hw // t))
        if n >= 4 and n % 2 == 0:
            return t
    for t in cands:                     # fallback: at least 2 steps
        n = batch * (-(-hw // t))
        if n >= 2:
            return t
    return cands[0]


def _fused_heads_kernel(num_layers, n_heads, head_conv, compute_dtype,
                        x_ref, *refs):
    """Fused multi-head per-pixel MLP (channels on sublanes, pixels on lanes).

    x_ref : (Cin, tile)            feature tile, pixels on lanes
    refs  : (w0, b0, [w_mid, b_mid, ...], w_fin, b_fin, out_ref)
      w0    : (n_heads*head_conv, Cin)          wide fused layer 0
      w_mid : (n_heads, head_conv, head_conv)   stacked per-head hidden layers
      w_fin : (sum_c_pad, n_heads*head_conv)    block-diagonal final layer
    out   : (sum_c_pad, tile)  -- lane-dense, sublane-aligned stores
    """
    out_ref = refs[-1]
    wb = refs[:-1]
    tile = x_ref.shape[-1]

    def _c(v):  # cast MXU operands only; accumulation / bias / ReLU stay f32
        return v if v.dtype == compute_dtype else v.astype(compute_dtype)

    # layer 0: all heads in one wide matmul over the shared feature tile
    h = jnp.dot(wb[0][...], _c(x_ref[...]), preferred_element_type=jnp.float32)
    h = h + wb[1][...].astype(jnp.float32)

    for l in range(1, num_layers):
        h = jnp.maximum(h, 0.0)                     # ReLU between convs (f32 VPU)
        w = wb[2 * l][...]
        b = wb[2 * l + 1][...].astype(jnp.float32)
        if l < num_layers - 1:
            # per-head square hidden layers: stacked batched matmul
            # (== einsum 'hoc,hcm->hom') -- no block-diagonal zero MXU work.
            h3 = _c(h).reshape(n_heads, head_conv, tile)
            h3 = lax.dot_general(w, h3, (((2,), (1,)), ((0,), (0,))),
                                 preferred_element_type=jnp.float32) + b
            h = h3.reshape(n_heads * head_conv, tile)
        else:
            # final layer: fused block-diagonal weight, rows padded to x8 so the
            # store is sublane-aligned; at these class counts the fused matmul
            # needs no more MXU pushes than n_heads separate tiny dots.
            h = jnp.dot(w, _c(h), preferred_element_type=jnp.float32) + b

    out_ref[...] = h.astype(out_ref.dtype)


def _pack_group(group, compute_dtype):
    """Pack the fused weight/bias chain for heads sharing a conv depth.

    group: list of (name, ws, bs); ws[l]: (Cin_l, Cout_l), bs[l]: (1, Cout_l).
    Weights are cast to compute_dtype; biases stay f32 (added on the f32
    accumulator inside the kernel)."""
    num_layers = len(group[0][1])
    n_heads = len(group)
    classes = [ws[-1].shape[1] for _, ws, _ in group]
    sum_c = sum(classes)
    sum_c_pad = _round_up(sum_c, 8)

    fused_ws, fused_bs = [], []

    if num_layers == 1:
        # single conv per head: one wide fused matmul straight to padded output
        w0 = jnp.concatenate([ws[0].T for _, ws, _ in group], axis=0)
        b0 = jnp.concatenate([bs[0].reshape(-1, 1) for _, _, bs in group], axis=0)
        w0 = jnp.pad(w0, ((0, sum_c_pad - sum_c), (0, 0)))
        b0 = jnp.pad(b0, ((0, sum_c_pad - sum_c), (0, 0)))
        fused_ws.append(w0.astype(compute_dtype))
        fused_bs.append(b0.astype(jnp.float32))
        head_conv = 8  # unused
    else:
        head_conv = group[0][1][0].shape[1]
        for _, ws, _ in group:
            assert all(w.shape[1] == head_conv for w in ws[:-1]), \
                "SepHead uses a single head_conv for all hidden layers"
        if num_layers > 2:
            # TODO(synk): head_conv not a multiple of 8 would need a
            # block-diagonal fallback for the stacked hidden layers.
            assert head_conv % 8 == 0

        # layer 0: shared input -> concatenate per-head weights along output rows
        w0 = jnp.concatenate([ws[0].T for _, ws, _ in group], axis=0)      # (n*hc, Cin)
        b0 = jnp.concatenate([bs[0].reshape(-1, 1) for _, _, bs in group], axis=0)
        fused_ws.append(w0.astype(compute_dtype))
        fused_bs.append(b0.astype(jnp.float32))

        # hidden layers 1..L-2: stacked per-head (no zero padding / redundancy)
        for l in range(1, num_layers - 1):
            wst = jnp.stack([ws[l].T for _, ws, _ in group], axis=0)        # (n, hc, hc)
            bst = jnp.stack([bs[l].reshape(-1, 1) for _, _, bs in group], axis=0)
            fused_ws.append(wst.astype(compute_dtype))
            fused_bs.append(bst.astype(jnp.float32))

        # final layer: block-diagonal fused, output rows padded to a multiple of 8
        wf = jnp.zeros((sum_c_pad, n_heads * head_conv), jnp.float32)
        bf = jnp.zeros((sum_c_pad, 1), jnp.float32)
        ro = 0
        for hi, (_, ws, bs) in enumerate(group):
            c = ws[-1].shape[1]
            wf = wf.at[ro:ro + c, hi * head_conv:(hi + 1) * head_conv].set(ws[-1].T)
            bf = bf.at[ro:ro + c, :].set(bs[-1].reshape(-1, 1))
            ro += c
        fused_ws.append(wf.astype(compute_dtype))
        fused_bs.append(bf.astype(jnp.float32))

    head_slices = []
    off = 0
    for name, ws, _ in group:
        c = ws[-1].shape[1]
        head_slices.append((name, off, c))
        off += c
    return fused_ws, fused_bs, head_slices, n_heads, head_conv


def _run_fused(x3, fused_ws, fused_bs, *, n_heads, head_conv, tile,
               compute_dtype, out_dtype):
    """x3: (B, C, HW).  Returns the concatenated head outputs (B, sum_c_pad, HW)."""
    B, C, HW = x3.shape
    num_layers = len(fused_ws)
    sum0 = fused_ws[0].shape[0]
    sum_c_pad = fused_ws[-1].shape[0]
    grid = (B, pl.cdiv(HW, tile))

    in_specs = [pl.BlockSpec((None, C, tile), lambda b, i: (b, 0, i))]
    args = [x3]
    for w, b in zip(fused_ws, fused_bs):
        # weights/biases are tiny full-array blocks, resident across grid steps
        in_specs.append(pl.BlockSpec(w.shape, lambda bb, ii, n=w.ndim: (0,) * n))
        in_specs.append(pl.BlockSpec(b.shape, lambda bb, ii, n=b.ndim: (0,) * n))
        args.append(w)
        args.append(b)
    out_specs = pl.BlockSpec((None, sum_c_pad, tile), lambda b, i: (b, 0, i))
    out_shape = jax.ShapeDtypeStruct((B, sum_c_pad, HW), out_dtype)

    weight_bytes = sum(int(w.size) * w.dtype.itemsize + int(b.size) * b.dtype.itemsize
                       for w, b in zip(fused_ws, fused_bs))
    m_total = B * HW
    flops = 0
    for w in fused_ws:
        p = 1
        for d in w.shape:
            p *= int(d)
        flops += 2 * p * m_total
    bytes_accessed = (int(x3.size) * x3.dtype.itemsize
                      + B * sum_c_pad * HW * jnp.dtype(out_dtype).itemsize
                      + weight_bytes)

    # tight, computed VMEM budget (do not blanket-reserve half of v7x's 64 MiB);
    # 2x headroom over the real footprint for Mosaic internal scratch.
    dyn = (2 * C * tile * x3.dtype.itemsize          # double-buffered input tile
           + 2 * sum_c_pad * tile * 4                # double-buffered output tile
           + 2 * sum0 * tile * 4                     # live f32 activation (+ cast copy)
           + 2 * weight_bytes)                       # resident fused weights/biases
    vmem_limit = int(max(8 << 20, min(2 * dyn + (4 << 20), 64 << 20)))

    return pl.pallas_call(
        functools.partial(_fused_heads_kernel, num_layers, n_heads, head_conv,
                          compute_dtype),
        grid=grid,
        in_specs=in_specs,
        out_specs=out_specs,
        out_shape=out_shape,
        compiler_params=pltpu.CompilerParams(
            dimension_semantics=("parallel", "parallel"),
            vmem_limit_bytes=vmem_limit),
        cost_estimate=pl.CostEstimate(
            flops=int(flops), transcendentals=0,
            bytes_accessed=int(bytes_accessed)),
    )(*args)


def init_sep_head_params(key, in_channels, heads, head_conv=64, init_bias=-2.19):
    """Deterministic parameter init matching SepHead.__init__ shapes.

    Each head: (num_conv - 1) x [Conv2d(->head_conv, 1x1), ReLU]
               + Conv2d(head_conv->classes, 1x1).
    1x1 conv weights stored as (Cin, Cout) matrices, biases as (1, Cout)."""
    params = {}
    for head_name, (classes, num_conv) in heads.items():
        key, sub = jax.random.split(key)
        ws, bs = [], []
        cin = in_channels
        layer_dims = [head_conv] * (num_conv - 1) + [classes]
        for li, cout in enumerate(layer_dims):
            sub, kw, kb = jax.random.split(sub, 3)
            std = (2.0 / cin) ** 0.5                 # kaiming-style fan-in
            w = std * jax.random.normal(kw, (cin, cout), dtype=jnp.float32)
            is_final = li == len(layer_dims) - 1
            if is_final and 'hm' in head_name:
                b = jnp.full((1, cout), init_bias, dtype=jnp.float32)
            else:
                b = 0.01 * jax.random.normal(kb, (1, cout), dtype=jnp.float32)
            ws.append(w)
            bs.append(b)
            cin = cout
        params[head_name] = (ws, bs)
    return params


def sep_head_forward(params, x_nchw, *, tile_m=2048, compute_dtype=jnp.float32):
    """Equivalent of SepHead.forward: dict of per-head NCHW outputs.

    compute_dtype: dtype the MXU sees (weights + activation casts).  f32 matches
    the PyTorch module; bf16 is the production setting (f32 accumulation kept)."""
    B, C, H, W = x_nchw.shape
    hw = H * W
    # NCHW -> (B, C, H*W): free contiguous reshape; no transpose, no pad copy.
    x3 = x_nchw.reshape(B, C, hw)
    tile = _choose_tile_hw(hw, B, desired=tile_m)

    # fuse every head with the same depth into a single pallas_call
    groups = defaultdict(list)
    for name, (ws, bs) in params.items():
        groups[len(ws)].append((name, ws, bs))
    # TODO(synk): if heads span >1 depth group, each group re-reads the feature
    # map once; identity-padding shallower chains would fuse them into one call.

    ret = {}
    for group in groups.values():
        fused_ws, fused_bs, head_slices, n_heads, head_conv = _pack_group(
            group, compute_dtype)
        y = _run_fused(x3, fused_ws, fused_bs, n_heads=n_heads,
                       head_conv=head_conv, tile=tile,
                       compute_dtype=compute_dtype, out_dtype=x_nchw.dtype)
        y4 = y.reshape(B, -1, H, W)      # free reshape; channel axis already 2nd
        for name, off, c in head_slices:
            ret[name] = y4[:, off:off + c]
    return ret


def _reference_forward(params, x_nchw):
    """Pure-JAX reference (1x1 convs == per-pixel matmuls)."""
    B, C, H, W = x_nchw.shape
    x2d = jnp.transpose(x_nchw, (0, 2, 3, 1)).reshape(B * H * W, C)
    ret = {}
    for head_name, (ws, bs) in params.items():
        h = x2d
        for li, (w, b) in enumerate(zip(ws, bs)):
            h = h @ w + b
            if li < len(ws) - 1:
                h = jnp.maximum(h, 0.0)
        cout = h.shape[-1]
        ret[head_name] = h.reshape(B, H, W, cout).transpose(0, 3, 1, 2)
    return ret


if __name__ == "__main__":
    key = jax.random.PRNGKey(0)

    # heads = {name: (num_output_classes, num_conv)}
    heads = {
        'reg':    (2, 2),
        'height': (1, 2),
        'dim':    (3, 2),
        'rot':    (2, 2),
        'hm':     (2, 2),
    }
    in_channels = 4
    head_conv = 32
    B, H, W = 2, 16, 16

    key, kx, kp = jax.random.split(key, 3)
    x = jax.random.normal(kx, (B, in_channels, H, W), dtype=jnp.float32)
    params = init_sep_head_params(kp, in_channels, heads, head_conv=head_conv)
    ref = _reference_forward(params, x)

    # 1) f32 path: exact match to the reference
    out = sep_head_forward(params, x)
    out = jax.tree_util.tree_map(jax.block_until_ready, out)
    for name in heads:
        assert out[name].shape == ref[name].shape, name
        assert jnp.allclose(out[name], ref[name], atol=1e-4, rtol=1e-4), name

    # 2) pixel count not a multiple of 128 -> ragged last tile (block masking)
    key, kx2 = jax.random.split(key)
    x_odd = jax.random.normal(kx2, (1, in_channels, 9, 13), dtype=jnp.float32)
    out_odd = sep_head_forward(params, x_odd)
    out_odd = jax.tree_util.tree_map(jax.block_until_ready, out_odd)
    ref_odd = _reference_forward(params, x_odd)
    for name in heads:
        assert out_odd[name].shape == ref_odd[name].shape, name
        assert jnp.allclose(out_odd[name], ref_odd[name],
                            atol=1e-4, rtol=1e-4), name

    # 3) bf16 MXU streaming (production setting): f32 accumulation, looser tol
    out_bf = sep_head_forward(params, x, compute_dtype=jnp.bfloat16)
    out_bf = jax.tree_util.tree_map(jax.block_until_ready, out_bf)
    for name in heads:
        err = float(jnp.max(jnp.abs(out_bf[name].astype(jnp.float32) - ref[name])))
        scale = float(jnp.max(jnp.abs(ref[name]))) + 1.0
        assert err <= 5e-2 * scale, (name, err, scale)

    # 4) deeper heads (num_conv=3) exercise the stacked per-head hidden layer
    key, kp3 = jax.random.split(key)
    heads3 = {'hm': (2, 3), 'reg': (2, 3), 'dim': (3, 3)}
    params3 = init_sep_head_params(kp3, in_channels, heads3, head_conv=head_conv)
    out3 = sep_head_forward(params3, x)
    out3 = jax.tree_util.tree_map(jax.block_until_ready, out3)
    ref3 = _reference_forward(params3, x)
    for name in heads3:
        assert out3[name].shape == ref3[name].shape, name
        assert jnp.allclose(out3[name], ref3[name], atol=1e-4, rtol=1e-4), name

    print("KERNEL_OK")
</pallas_src>

<mosaic_0001>
module attributes {stable_mosaic.version = 11 : i64} {
  func.func @_fused_heads_kernel(%arg0: i32, %arg1: i32, %arg2: memref<1x4x128xf32, #tpu.memory_space<vmem>>, %arg3: memref<160x4xf32, #tpu.memory_space<vmem>>, %arg4: memref<160x1xf32, #tpu.memory_space<vmem>>, %arg5: memref<16x160xf32, #tpu.memory_space<vmem>>, %arg6: memref<16x1xf32, #tpu.memory_space<vmem>>, %arg7: memref<1x16x128xf32, #tpu.memory_space<vmem>>) attributes {dimension_semantics = [#tpu.dimension_semantics<parallel>, #tpu.dimension_semantics<parallel>], iteration_bounds = array<i64: 2, 2>, scalar_prefetch = 0 : i64, scratch_operands = 0 : i64, tpu.core_type = #tpu.core_type<tc>, window_params = [{transform_indices = @transform_0, window_bounds = array<i64: 1, 4, 128>}, {pipeline_mode = #tpu.pipeline_mode<synchronous>, transform_indices = @transform_1, window_bounds = array<i64: 160, 4>}, {pipeline_mode = #tpu.pipeline_mode<synchronous>, transform_indices = @transform_2, window_bounds = array<i64: 160, 1>}, {pipeline_mode = #tpu.pipeline_mode<synchronous>, transform_indices = @transform_3, window_bounds = array<i64: 16, 160>}, {pipeline_mode = #tpu.pipeline_mode<synchronous>, transform_indices = @transform_4, window_bounds = array<i64: 16, 1>}, {transform_indices = @transform_5, window_bounds = array<i64: 1, 16, 128>}]} {
    %c0 = arith.constant 0 : index
    %c0_0 = arith.constant 0 : index
    %0 = vector.load %arg3[%c0, %c0_0] : memref<160x4xf32, #tpu.memory_space<vmem>>, vector<160x4xf32>
    %c0_1 = arith.constant 0 : index
    %c0_2 = arith.constant 0 : index
    %c0_3 = arith.constant 0 : index
    %1 = vector.load %arg2[%c0_1, %c0_2, %c0_3] : memref<1x4x128xf32, #tpu.memory_space<vmem>>, vector<1x4x128xf32>
    %2 = vector.shape_cast %1 : vector<1x4x128xf32> to vector<4x128xf32>
    %cst = arith.constant dense<0.000000e+00> : vector<160x128xf32>
    %3 = tpu.matmul %0, %2, %cst {dimension_numbers = #tpu.dot_dimension_numbers<[1], [0], [0], [1], [0, 0, 1, 1], [], []>} : vector<160x4xf32>, vector<4x128xf32>, vector<160x128xf32> -> vector<160x128xf32>
    %c0_4 = arith.constant 0 : index
    %c0_5 = arith.constant 0 : index
    %4 = vector.load %arg4[%c0_4, %c0_5] : memref<160x1xf32, #tpu.memory_space<vmem>>, vector<160x1xf32>
    %5 = vector.broadcast %4 : vector<160x1xf32> to vector<160x128xf32>
    %6 = arith.addf %3, %5 : vector<160x128xf32>
    %cst_6 = arith.constant 0.000000e+00 : f32
    %7 = vector.broadcast %cst_6 : f32 to vector<160x128xf32>
    %8 = arith.maximumf %6, %7 : vector<160x128xf32>
    %c0_7 = arith.constant 0 : index
    %c0_8 = arith.constant 0 : index
    %9 = vector.load %arg5[%c0_7, %c0_8] : memref<16x160xf32, #tpu.memory_space<vmem>>, vector<16x160xf32>
    %c0_9 = arith.constant 0 : index
    %c0_10 = arith.constant 0 : index
    %10 = vector.load %arg6[%c0_9, %c0_10] : memref<16x1xf32, #tpu.memory_space<vmem>>, vector<16x1xf32>
    %cst_11 = arith.constant dense<0.000000e+00> : vector<16x128xf32>
    %11 = tpu.matmul %9, %8, %cst_11 {dimension_numbers = #tpu.dot_dimension_numbers<[1], [0], [0], [1], [0, 0, 1, 1], [], []>} : vector<16x160xf32>, vector<160x128xf32>, vector<16x128xf32> -> vector<16x128xf32>
    %12 = vector.broadcast %10 : vector<16x1xf32> to vector<16x128xf32>
    %13 = arith.addf %11, %12 : vector<16x128xf32>
    %c0_12 = arith.constant 0 : index
    %c0_13 = arith.constant 0 : index
    %c0_14 = arith.constant 0 : index
    %14 = vector.load %arg7[%c0_12, %c0_13, %c0_14] : memref<1x16x128xf32, #tpu.memory_space<vmem>>, vector<1x16x128xf32>
    %15 = vector.shape_cast %14 : vector<1x16x128xf32> to vector<16x128xf32>
    %16 = vector.shape_cast %13 : vector<16x128xf32> to vector<1x16x128xf32>
    tpu.vector_store %arg7[%c0_12, %c0_13, %c0_14], %16 {strides = array<i32>} : memref<1x16x128xf32, #tpu.memory_space<vmem>>, vector<1x16x128xf32>,
    return
  }
  func.func @transform_0(%arg0: i32, %arg1: i32) -> (i32, i32, i32) {
    %c0_i32 = arith.constant 0 : i32
    %c0_i32_0 = arith.constant 0 : i32
    return %arg0, %c0_i32, %arg1 : i32, i32, i32
  }
  func.func @transform_1(%arg0: i32, %arg1: i32) -> (i32, i32) {
    %c0_i32 = arith.constant 0 : i32
    %c0_i32_0 = arith.constant 0 : i32
    %c0_i32_1 = arith.constant 0 : i32
    return %c0_i32, %c0_i32_0 : i32, i32
  }
  func.func @transform_2(%arg0: i32, %arg1: i32) -> (i32, i32) {
    %c0_i32 = arith.constant 0 : i32
    %c0_i32_0 = arith.constant 0 : i32
    %c0_i32_1 = arith.constant 0 : i32
    return %c0_i32, %c0_i32_0 : i32, i32
  }
  func.func @transform_3(%arg0: i32, %arg1: i32) -> (i32, i32) {
    %c0_i32 = arith.constant 0 : i32
    %c0_i32_0 = arith.constant 0 : i32
    %c0_i32_1 = arith.constant 0 : i32
    return %c0_i32, %c0_i32_0 : i32, i32
  }
  func.func @transform_4(%arg0: i32, %arg1: i32) -> (i32, i32) {
    %c0_i32 = arith.constant 0 : i32
    %c0_i32_0 = arith.constant 0 : i32
    %c0_i32_1 = arith.constant 0 : i32
    return %c0_i32, %c0_i32_0 : i32, i32
  }
  func.func @transform_5(%arg0: i32, %arg1: i32) -> (i32, i32, i32) {
    %c0_i32 = arith.constant 0 : i32
    %c0_i32_0 = arith.constant 0 : i32
    return %arg0, %c0_i32, %arg1 : i32, i32, i32
  }
}

</mosaic_0001>

<bundles_post_ra>
// kernel: tpu_custom_call.1
= control target key start
LH: loop header
LB: loop body
LE: loop exit
PB: predicated region body
PF: predicated region fallthrough
CT: control target
= control target key end

     0   :  { %10 = vsyncpa [#allocation3], 0  ;;  %s1502_s0 = inlined_call_operand.vmem [shape: f32[2,4,256], index: 0, kind: input, shape index: {}]   ;;  %s1503_s1 = inlined_call_operand.vmem [shape: f32[160,4], index: 1, kind: input, shape index: {}]   ;;  %s1504_s2 = inlined_call_operand.vmem [shape: f32[160,1], index: 2, kind: input, shape index: {}]   ;;  %s1505_s3 = inlined_call_operand.vmem [shape: f32[16,160], index: 3, kind: input, shape index: {}]   ;;  %s1506_s4 = inlined_call_operand.vmem [shape: f32[16,1], index: 4, kind: input, shape index: {}]   ;;  %s1507_s5 = inlined_call_operand.hbm [shape: f32[2,16,256], index: 5, kind: output, shape index: {}]  }
   0x1   :  { %12 = vsyncpa [#allocation3 + $0x1], 0  ;;  %s1184_s18 = smov 0   ;;  %s1186_s19 = smov 0  }
   0x2   :  { %s1188_s20 = smov 0   ;;  %s1190_s21 = smov 0  }
   0x3   :  { %s1192_s22 = smov 0   ;;  %s1194_s23 = smov 0  }
   0x4   :  { %s1196_s24 = smov 0   ;;  %s1198_s25 = smov 0  }
   0x5 LB: > { %s835_s26 = sadd.s32 4294967295, %s1146_s25   ;;  %s836_s27 = sadd.s32 4294967294, %s1146_s25   ;;  %s1146_s25 = sphi %s1198_s25, %s18_s25   ;;  %s1142_s24 = sphi %s1196_s24, %s1522_s24   ;;  %s1138_s23 = sphi %s1194_s23, %s1521_s23   ;;  %s1134_s22 = sphi %s1192_s22, %s1520_s22   ;;  %s1130_s21 = sphi %s1190_s21, %s1519_s21   ;;  %s1126_s20 = sphi %s1188_s20, %s1518_s20   ;;  %s1122_s19 = sphi %s1186_s19, %s1517_s19   ;;  %s1118_s18 = sphi %s1184_s18, %s1516_s18  }
   0x6   : > { %s27_s28 = sadd.s32 1, %s1138_s23  ;;  %s30_s29 = sadd.s32 1, %s1142_s24 }
   0x7   : > { %p28_p0 = scmp.ge.s32.totalorder %s27_s28, 2  ;;  %p161_p1 = scmp.ne.s32.totalorder %s1126_s20, %s1122_s19 }
   0x8   : > { %p162_p2 = scmp.eq.s32.totalorder %s835_s26, 3  ;;  %p167_p5 = scmp.ne.s32.totalorder %s1122_s19, %s1118_s18 }
   0x9   : > { %s1524_s28 = smov (%p28_p0, %s27_s28), 0  ;;  %s1526_s29 = smov (!%p28_p0, %s30_s29), %s1142_s24 }
   0xa   : > { %1510 = sst [smem:[#allocation5_spill]] %s1524_s28  ;;  %s147_s30 = ssub.s32 %s1138_s23, %s1524_s28 }
   0xb   : > { %p1235_p3 = por %p162_p2, %p161_p1  ;;  %p32_p4 = scmp.ge.s32.totalorder %s1526_s29, 2 }
   0xc   : > { %p168_p6 = scmp.eq.s32.totalorder %s836_s27, 3  ;;  %p839_p7 = scmp.ge.s32.totalorder %s1146_s25, 1 }
   0xd   : > { %s1528_s29 = smov (%p32_p4, %s1526_s29), 0  ;;  %p209_p9 = scmp.lt.s32.totalorder %s1146_s25, 5 }
   0xe   : > { %1512 = sst [smem:[#allocation6_spill]] %s1528_s29  ;;  %p1244_p8 = por %p168_p6, %p167_p5 }
   0xf   : > { %s146_s8 = ssub.s32 %s1142_s24, %s1528_s29  ;;  %s151_s9 = sadd.s32 1, %s1126_s20 }
  0x10   : > { %s148_s10 = sor.u32 %s147_s30, %s146_s8  ;;  %p210_p10 = pnand %p839_p7, %p209_p9 }
  0x11   : > { %p149_p11 = scmp.eq.s32.totalorder %s148_s10, 0  ;;  %p240_p12 = scmp.lt.s32.totalorder (!%p210_p10), %s1134_s22, 1  ;;  %v248_v0 = vld [vmem:[%s1503_s1] sm:$0xff] (!%p210_p10)  ;;  %vm389_vm0 = vcmask (!%p210_p10), 31744   ;;  %v1148_v1 = vmov (!%p210_p10), 0   ;;  %vm450_vm1 = vcmask (!%p210_p10), 1043456  }
  0x12   : > { %213 = sbr.rel (%p210_p10) target bundleno = 522 (0x20a), region = 40  ;;  %p242_p13 = scmp.lt.s32.totalorder (!%p210_p10), %s1130_s21, 1  ;;  %894 = vmatprep.mubr.msk.f32.mxu0 (!%p210_p10), %vm389_vm0, %v248_v0  ;;  %1050 = vset.pattern.permute.xlu0 (!%p210_p10), %v1148_v1  ;;  %v269_v2 = vld [vmem:[%s1504_s2] sm:$0xff] (!%p210_p10)  ;;  %v271_v3 = vld [vmem:[%s1504_s2 + $0x10] sm:$0xff] (!%p210_p10)  ;;  %v249_v5 = vld [vmem:[%s1503_s1 + $0x8] sm:$0xff] (!%p210_p10)  ;;  %v1149_v44 = vmov (!%p210_p10), 0.0|0.0  }
  0x13   : > { %s1253_s11 = scalar_select %p149_p11, %s1126_s20, %s151_s9  }
  0x14   : > { %1051 = vset.pattern.permute.xlu1 (!%p210_p10), %v1148_v1  ;;  %291 = vperm.xlu0 (!%p210_p10), %1050, %v269_v2   ;;  %v250_v6 = vld [vmem:[%s1503_s1 + $0x10] sm:$0xff] (!%p210_p10)  ;;  %v270_v7 = vld [vmem:[%s1504_s2 + $0x8] sm:$0xff] (!%p210_p10)  ;;  %v272_v8 = vld [vmem:[%s1504_s2 + $0x18] sm:$0xff] (!%p210_p10)  ;;  %vm655_vm2 = vcmask (!%p210_p10), 261120   ;;  %s1150_s9 = smov (!%p210_p10), [#allocation2]  }
  0x15   : > { %301 = vperm.xlu1 (!%p210_p10), %1051, %v271_v3   ;;  %v251_v9 = vld [vmem:[%s1503_s1 + $0x18] sm:$0xff] (!%p210_p10)  ;;  %v252_v10 = vld [vmem:[%s1503_s1 + $0x20] sm:$0xff] (!%p210_p10)  ;;  %v274_v12 = vld [vmem:[%s1504_s2 + $0x28] sm:$0xff] (!%p210_p10)  ;;  %954 = vmatprep.subr.bf16.mxu1 (!%p210_p10), %v1149_v44  ;;  %s1056_s10 = sshll.u32 (!%p210_p10), %s1150_s9, 4  ;;  %s1057_s10 = int_to_ptr.vmem [resolvable:$false] %s1056_s10 }
  0x16   : > { %v273_v11 = vld [vmem:[%s1504_s2 + $0x20] sm:$0xff] (!%p210_p10)  ;;  %v253_v13 = vld [vmem:[%s1503_s1 + $0x28] sm:$0xff] (!%p210_p10)  ;;  %v254_v14 = vld [vmem:[%s1503_s1 + $0x30] sm:$0xff] (!%p210_p10)  ;;  %s1058_s12 = scalar_lea.vmem (!%p210_p10), %s1057_s10, 512 }
  0x17   : > { %v275_v15 = vld [vmem:[%s1504_s2 + $0x30] sm:$0xff] (!%p210_p10)  ;;  %v276_v16 = vld [vmem:[%s1504_s2 + $0x38] sm:$0xff] (!%p210_p10)  ;;  %v256_v18 = vld [vmem:[%s1503_s1 + $0x40] sm:$0xff] (!%p210_p10) }
  0x18   : > { %296 = vperm.xlu0 (!%p210_p10), %1050, %v270_v7   ;;  %v255_v17 = vld [vmem:[%s1503_s1 + $0x38] sm:$0xff] (!%p210_p10)  ;;  %v277_v19 = vld [vmem:[%s1504_s2 + $0x40] sm:$0xff] (!%p210_p10)  ;;  %v278_v20 = vld [vmem:[%s1504_s2 + $0x48] sm:$0xff] (!%p210_p10) }
  0x19   : > { %s241_s14 = scalar_select %p240_p12, %s1134_s22, 1  ;;  %306 = vperm.xlu1 %1051, %v272_v8   ;;  %v257_v21 = vld [vmem:[%s1503_s1 + $0x48] sm:$0xff]  ;;  %v258_v22 = vld [vmem:[%s1503_s1 + $0x50] sm:$0xff]  ;;  %v280_v24 = vld [vmem:[%s1504_s2 + $0x58] sm:$0xff] }
  0x1a   : > { %s243_s15 = scalar_select %p242_p13, %s1130_s21, 1  ;;  %v279_v23 = vld [vmem:[%s1504_s2 + $0x50] sm:$0xff]  ;;  %v259_v25 = vld [vmem:[%s1503_s1 + $0x58] sm:$0xff]  ;;  %v260_v26 = vld [vmem:[%s1503_s1 + $0x60] sm:$0xff] }
  0x1b   : > { %s841_s16 = sshll.u32 %s241_s14, 1  ;;  %v281_v27 = vld [vmem:[%s1504_s2 + $0x60] sm:$0xff]  ;;  %v282_v28 = vld [vmem:[%s1504_s2 + $0x68] sm:$0xff]  ;;  %v262_v30 = vld [vmem:[%s1503_s1 + $0x70] sm:$0xff]  ;;  %s237_s14 = sand.u32 1, %s1122_s19  }
  0x1c   : > { %s245_s17 = sadd.s32 %s841_s16, %s243_s15  ;;  %311 = vperm.xlu0 %1050, %v273_v11   ;;  %v261_v29 = vld [vmem:[%s1503_s1 + $0x68] sm:$0xff]  ;;  %v283_v31 = vld [vmem:[%s1504_s2 + $0x70] sm:$0xff]  ;;  %v284_v32 = vld [vmem:[%s1504_s2 + $0x78] sm:$0xff]  ;;  %s840_s15 = sshll.u32 %s237_s14, 4 }
  0x1d   : > { %s842_s26 = sshll.u32 %s245_s17, 2  ;;  %316 = vperm.xlu1 %1051, %v274_v12   ;;  %v263_v33 = vld [vmem:[%s1503_s1 + $0x78] sm:$0xff]  ;;  %v264_v34 = vld [vmem:[%s1503_s1 + $0x80] sm:$0xff]  ;;  %v286_v36 = vld [vmem:[%s1504_s2 + $0x88] sm:$0xff]  ;;  %s867_s16 = sshll.u32 %s1134_s22, 2 }
  0x1e   : > { %s247_s8 = scalar_lea.vmem %s1502_s0, %s842_s26  ;;  %v285_v35 = vld [vmem:[%s1504_s2 + $0x80] sm:$0xff]  ;;  %v265_v37 = vld [vmem:[%s1503_s1 + $0x88] sm:$0xff]  ;;  %v266_v38 = vld [vmem:[%s1503_s1 + $0x90] sm:$0xff]  ;;  %s751_s17 = sadd.s32 %s1130_s21, %s867_s16 }
  0x1f   : > { %v268_v4 = vld [vmem:[%s247_s8] sm:$0xf]  ;;  %v287_v39 = vld [vmem:[%s1504_s2 + $0x90] sm:$0xff]  ;;  %v288_v40 = vld [vmem:[%s1504_s2 + $0x98] sm:$0xff]  ;;  %s239_s26 = scalar_lea.vmem [#allocation2], %s840_s15  ;;  %s868_s28 = sshll.u32 %s751_s17, 7 }
  0x20   : > { %892 = vmatprep.subr.msk.mxu0 %vm450_vm1, %v268_v4  ;;  %321 = vperm.xlu0 %1050, %v275_v15   ;;  %v267_v41 = vld [vmem:[%s1503_s1 + $0x98] sm:$0xff]  ;;  %v643_v42 = vld [vmem:[%s1506_s4] sm:$0xff]  ;;  %v644_v43 = vld [vmem:[%s1506_s4 + $0x8] sm:$0xff]  ;;  %s754_s27 = sshll.u32 %s239_s26, 4  ;;  %s1448_s8 = scalar_lea.hbm %s1507_s5, %s868_s28  ;;  %s1443_s27 = int_to_ptr.vmem [resolvable:$true] %s754_s27 }
  0x21   : > { %893 = vmatpush3.msk.msra.mxu0 %vm450_vm1, %v268_v4  ;;  %326 = vperm.xlu1 %1051, %v276_v16   ;;  %v640_v45 = vld [vmem:[%s1505_s3 + $0x8] sm:$0xff]  ;;  %v642_v46 = vld [vmem:[%s1505_s3 + $0x18] sm:$0xff]  ;;  %s1450_s21 = scalar_lea.sflag [#allocation3], %s237_s14  ;;  %s1052_s22 = scalar_lea.vmem %s1443_s27, 256 }
  0x22   : > { %895 = vmatmul.mubr.msk.f32.vlgmr.msra.gmra.mrb[0].mxu0 %vm389_vm0, %v249_v5  ;;  %924 = vmatprep.subr.bf16.mxu0 %v1149_v44  ;;  %p1053_p0 = scmp.ne.s32.totalorder %s1443_s27, %s1052_s22  ;;  %p1059_p4 = scmp.lt.s32.totalorder %s1443_s27, %s1057_s10 }
  0x23   : > { %897 = vmatprep.mubr.msk.f32.mxu0 %vm389_vm0, %v250_v6  ;;  %865 = vmatprep.mubr.msk.f32.mxu1 %vm655_vm2, %v642_v46  ;;  %p1060_p5 = scmp.lt.s32.totalorder %s1058_s12, %s1052_s22 }
  0x24   : > { %331 = vperm.xlu0 %1050, %v277_v19   ;;  %p1054_p1 = pnand %p1053_p0, %p1235_p3 }
  0x25   : > { %336 = vperm.xlu1 %1051, %v278_v20   ;;  %p1061_p6 = por %p1060_p5, %p1059_p4 }
  0x26   : > { %898 = vmatmul.mubr.msk.f32.gmra.mrb[2].mxu0 %vm389_vm0, %v251_v9  ;;  %p1055_p2 = pneg %p1054_p1 }
  0x27   : > { %900 = vmatprep.mubr.msk.f32.mxu0 %vm389_vm0, %v252_v10 }
  0x28   : > { %341 = vperm.xlu0 %1050, %v279_v23   ;;  %p1062_p7 = pnand %p1061_p6, %p1055_p2 }
  0x29   : > { %346 = vperm.xlu1 %1051, %v280_v24  }
  0x2a   : > { %901 = vmatmul.mubr.msk.f32.gmra.mrb[4].mxu0 %vm389_vm0, %v253_v13 }
  0x2b   : > { %903 = vmatprep.mubr.msk.f32.mxu0 %vm389_vm0, %v254_v14 }
  0x2c   : > { %351 = vperm.xlu0 %1050, %v281_v27  }
  0x2d   : > { %356 = vperm.xlu1 %1051, %v282_v28  }
  0x2e   : > { %904 = vmatmul.mubr.msk.f32.gmra.mrb[6].mxu0 %vm389_vm0, %v255_v17 }
  0x2f   : > { %906 = vmatprep.mubr.msk.f32.mxu0 %vm389_vm0, %v256_v18 }
  0x30   : > { %361 = vperm.xlu0 %1050, %v283_v31  }
  0x31   : > { %366 = vperm.xlu1 %1051, %v284_v32  }
  0x32   : > { %907 = vmatmul.mubr.msk.f32.gmra.mrb[8].mxu0 %vm389_vm0, %v257_v21 }
  0x33   : > { %909 = vmatprep.mubr.msk.f32.mxu0 %vm389_vm0, %v258_v22 }
  0x34   : > { %371 = vperm.xlu0 %1050, %v285_v35  }
  0x35   : > { %376 = vperm.xlu1 %1051, %v286_v36  }
  0x36   : > { %910 = vmatmul.mubr.msk.f32.gmra.mrb[10].mxu0 %vm389_vm0, %v259_v25 }
  0x37   : > { %912 = vmatprep.mubr.msk.f32.mxu0 %vm389_vm0, %v260_v26 }
  0x38   : > { %381 = vperm.xlu0 %1050, %v287_v39  }
  0x39   : > { %386 = vperm.xlu1 %1051, %v288_v40  }
  0x3a   : > { %913 = vmatmul.mubr.msk.f32.gmra.mrb[12].mxu0 %vm389_vm0, %v261_v29 }
  0x3b   : > { %915 = vmatprep.mubr.msk.f32.mxu0 %vm389_vm0, %v262_v30 }
  0x3c   : > { %647 = vperm.xlu0 %1050, %v643_v42  }
  0x3d   : > { %652 = vperm.xlu1 %1051, %v644_v43  }
  0x3e   : > { %916 = vmatmul.mubr.msk.f32.gmra.mrb[14].mxu0 %vm389_vm0, %v263_v33 }
  0x3f   : > { %918 = vmatprep.mubr.msk.f32.mxu0 %vm389_vm0, %v264_v34 }
  0x42   : > { %919 = vmatmul.mubr.msk.f32.gmra.mrb[16].mxu0 %vm389_vm0, %v265_v37 }
  0x43   : > { %921 = vmatprep.mubr.msk.f32.mxu0 %vm389_vm0, %v266_v38 }
  0x46   : > { %922 = vmatmul.mubr.msk.f32.gmra.mrb[18].mxu0 %vm389_vm0, %v267_v41 }
  0x47   : > { %864 = vmatprep.mubr.msk.f32.mxu0 %vm655_vm2, %v640_v45 }
  0x93   : > { %v292_v48 = vpop.permute.xlu0 %291 }
  0x94   : > { %v302_v47 = vpop.permute.xlu1 %301 }
  0x97   : > { %v297_v50 = vpop.permute.xlu0 %296 }
  0x98   : > { %v307_v49 = vpop.permute.xlu1 %306 }
  0x9b   : > { %v312_v52 = vpop.permute.xlu0 %311 }
  0x9c   : > { %v317_v51 = vpop.permute.xlu1 %316 }
  0x9f   : > { %v322_v55 = vpop.permute.xlu0 %321 }
  0xa0   : > { %v327_v53 = vpop.permute.xlu1 %326 }
  0xa3   : > { %v332_v3 = vpop.permute.xlu0 %331 }
  0xa4   : > { %v337_v0 = vpop.permute.xlu1 %336 }
  0xa7   : > { %v342_v15 = vpop.permute.xlu0 %341 }
  0xa8   : > { %v347_v12 = vpop.permute.xlu1 %346 }
  0xab   : > { %v352_v28 = vpop.permute.xlu0 %351 }
  0xac   : > { %v357_v25 = vpop.permute.xlu1 %356 }
  0xaf   : > { %v362_v40 = vpop.permute.xlu0 %361 }
  0xb0   : > { %v367_v37 = vpop.permute.xlu1 %366 }
  0xf5   : > { %v896_v54 = vpop.f32.mrb[0].mxu0 }
  0xf6   : > { %v526_v56 = vadd.f32 %v896_v54, %v297_v50  ;;  %v520_v57 = vpop.f32.mrb[1].mxu0  ;;  %v372_v54 = vpop.permute.xlu0 %371 }
  0xf7   : > { %v521_v58 = vadd.f32 %v520_v57, %v292_v48 }
  0xf8   : > { %v620_v59 = vmax.f32 %v526_v56, 0.0 }
  0xf9   : > { %v619_v60 = vmax.f32 %v521_v58, 0.0  ;;  %v899_v61 = vpop.f32.mrb[2].mxu0 }
  0xfa   : > { %v536_v62 = vadd.f32 %v899_v61, %v307_v49  ;;  %v530_v63 = vpop.f32.mrb[3].mxu0 }
  0xfb   : > { %v925_v1 = vpack.c.bf16 %v620_v59, %v619_v60  ;;  %v531_v2 = vadd.f32 %v530_v63, %v302_v47 }
  0xfc   : > { %v622_v4 = vmax.f32 %v536_v62, 0.0 }
  0xfd   : > { %v621_v5 = vmax.f32 %v531_v2, 0.0  ;;  %v902_v6 = vpop.f32.mrb[4].mxu0  ;;  %926 = vmatpush1.bf16.msra.mxu0 %v925_v1  ;;  %964 = vmatpush1.bf16.msra.mxu1 %v925_v1  ;;  %v382_v2 = vpop.permute.xlu0 %381 }
  0xfe   : > { %v546_v7 = vadd.f32 %v902_v6, %v317_v51  ;;  %v540_v8 = vpop.f32.mrb[5].mxu0  ;;  %927 = vmatprep.subr.bf16.mxu0 %v1149_v44  ;;  %955 = vmatprep.subr.bf16.mxu1 %v1149_v44  ;;  %v377_v51 = vpop.permute.xlu1 %376 }
  0xff   : > { %v928_v9 = vpack.c.bf16 %v622_v4, %v621_v5  ;;  %v541_v10 = vadd.f32 %v540_v8, %v312_v52 }
 0x100   : > { %v624_v11 = vmax.f32 %v546_v7, 0.0 }
 0x101   : > { %v623_v13 = vmax.f32 %v541_v10, 0.0  ;;  %v905_v14 = vpop.f32.mrb[6].mxu0  ;;  %929 = vmatpush1.bf16.msra.mxu0 %v928_v9  ;;  %965 = vmatpush1.bf16.msra.mxu1 %v928_v9  ;;  %v639_v10 = vld [vmem:[%s1505_s3] sm:$0xff] }
 0x102   : > { %v556_v16 = vadd.f32 %v905_v14, %v327_v53  ;;  %v550_v17 = vpop.f32.mrb[7].mxu0  ;;  %930 = vmatprep.subr.bf16.mxu0 %v1149_v44  ;;  %956 = vmatprep.subr.bf16.mxu1 %v1149_v44  ;;  %v387_v63 = vpop.permute.xlu1 %386 }
 0x103   : > { %v931_v18 = vpack.c.bf16 %v624_v11, %v623_v13  ;;  %v551_v19 = vadd.f32 %v550_v17, %v322_v55  ;;  %v641_v11 = vld [vmem:[%s1505_s3 + $0x10] sm:$0xff] }
 0x104   : > { %v626_v20 = vmax.f32 %v556_v16, 0.0 }
 0x105   : > { %v625_v21 = vmax.f32 %v551_v19, 0.0  ;;  %v908_v22 = vpop.f32.mrb[8].mxu0  ;;  %932 = vmatpush1.bf16.msra.mxu0 %v931_v18  ;;  %966 = vmatpush1.bf16.msra.mxu1 %v931_v18 }
 0x106   : > { %v566_v23 = vadd.f32 %v908_v22, %v337_v0  ;;  %v560_v24 = vpop.f32.mrb[9].mxu0  ;;  %933 = vmatprep.subr.bf16.mxu0 %v1149_v44  ;;  %957 = vmatprep.subr.bf16.mxu1 %v1149_v44 }
 0x107   : > { %v934_v26 = vpack.c.bf16 %v626_v20, %v625_v21  ;;  %v561_v27 = vadd.f32 %v560_v24, %v332_v3 }
 0x108   : > { %v628_v29 = vmax.f32 %v566_v23, 0.0 }
 0x109   : > { %v627_v30 = vmax.f32 %v561_v27, 0.0  ;;  %v911_v31 = vpop.f32.mrb[10].mxu0  ;;  %935 = vmatpush1.bf16.msra.mxu0 %v934_v26  ;;  %967 = vmatpush1.bf16.msra.mxu1 %v934_v26 }
 0x10a   : > { %v576_v32 = vadd.f32 %v911_v31, %v347_v12  ;;  %v570_v33 = vpop.f32.mrb[11].mxu0  ;;  %936 = vmatprep.subr.bf16.mxu0 %v1149_v44  ;;  %958 = vmatprep.subr.bf16.mxu1 %v1149_v44  ;;  %v653_v12 = vpop.permute.xlu1 %652 }
 0x10b   : > { %v937_v34 = vpack.c.bf16 %v628_v29, %v627_v30  ;;  %v571_v35 = vadd.f32 %v570_v33, %v342_v15 }
 0x10c   : > { %v630_v36 = vmax.f32 %v576_v32, 0.0 }
 0x10d   : > { %v629_v38 = vmax.f32 %v571_v35, 0.0  ;;  %v914_v39 = vpop.f32.mrb[12].mxu0  ;;  %938 = vmatpush1.bf16.msra.mxu0 %v937_v34  ;;  %968 = vmatpush1.bf16.msra.mxu1 %v937_v34 }
 0x10e   : > { %v586_v41 = vadd.f32 %v914_v39, %v357_v25  ;;  %v580_v42 = vpop.f32.mrb[13].mxu0  ;;  %939 = vmatprep.subr.bf16.mxu0 %v1149_v44  ;;  %959 = vmatprep.subr.bf16.mxu1 %v1149_v44 }
 0x10f   : > { %v940_v43 = vpack.c.bf16 %v630_v36, %v629_v38  ;;  %v581_v45 = vadd.f32 %v580_v42, %v352_v28 }
 0x110   : > { %v632_v46 = vmax.f32 %v586_v41, 0.0 }
 0x111   : > { %v631_v47 = vmax.f32 %v581_v45, 0.0  ;;  %v917_v48 = vpop.f32.mrb[14].mxu0  ;;  %941 = vmatpush1.bf16.msra.mxu0 %v940_v43  ;;  %969 = vmatpush1.bf16.msra.mxu1 %v940_v43 }
 0x112   : > { %v596_v49 = vadd.f32 %v917_v48, %v367_v37  ;;  %v590_v50 = vpop.f32.mrb[15].mxu0  ;;  %942 = vmatprep.subr.bf16.mxu0 %v1149_v44  ;;  %960 = vmatprep.subr.bf16.mxu1 %v1149_v44 }
 0x113   : > { %v943_v52 = vpack.c.bf16 %v632_v46, %v631_v47  ;;  %v591_v53 = vadd.f32 %v590_v50, %v362_v40 }
 0x114   : > { %v634_v55 = vmax.f32 %v596_v49, 0.0 }
 0x115   : > { %v633_v56 = vmax.f32 %v591_v53, 0.0  ;;  %v920_v57 = vpop.f32.mrb[16].mxu0  ;;  %944 = vmatpush1.bf16.msra.mxu0 %v943_v52  ;;  %970 = vmatpush1.bf16.msra.mxu1 %v943_v52 }
 0x116   : > { %v606_v58 = vadd.f32 %v920_v57, %v377_v51  ;;  %v600_v59 = vpop.f32.mrb[17].mxu0  ;;  %945 = vmatprep.subr.bf16.mxu0 %v1149_v44  ;;  %961 = vmatprep.subr.bf16.mxu1 %v1149_v44 }
 0x117   : > { %v946_v60 = vpack.c.bf16 %v634_v55, %v633_v56  ;;  %v601_v61 = vadd.f32 %v600_v59, %v372_v54 }
 0x118   : > { %v636_v62 = vmax.f32 %v606_v58, 0.0 }
 0x119   : > { %v635_v0 = vmax.f32 %v601_v61, 0.0  ;;  %v923_v1 = vpop.f32.mrb[18].mxu0  ;;  %947 = vmatpush1.bf16.msra.mxu0 %v946_v60  ;;  %971 = vmatpush1.bf16.msra.mxu1 %v946_v60 }
 0x11a   : > { %v616_v3 = vadd.f32 %v923_v1, %v387_v63  ;;  %v610_v4 = vpop.f32.mrb[19].mxu0  ;;  %948 = vmatprep.subr.bf16.mxu0 %v1149_v44  ;;  %962 = vmatprep.subr.bf16.mxu1 %v1149_v44 }
 0x11b   : > { %v949_v5 = vpack.c.bf16 %v636_v62, %v635_v0  ;;  %v611_v6 = vadd.f32 %v610_v4, %v382_v2 }
 0x11c   : > { %v638_v7 = vmax.f32 %v616_v3, 0.0 }
 0x11d   : > { %v637_v8 = vmax.f32 %v611_v6, 0.0  ;;  %950 = vmatpush1.bf16.msra.mxu0 %v949_v5  ;;  %972 = vmatpush1.bf16.msra.mxu1 %v949_v5 }
 0x11e   : > { %951 = vmatprep.subr.bf16.mxu0 %v1149_v44  ;;  %963 = vmatprep.subr.bf16.mxu1 %v1149_v44  ;;  %v648_v44 = vpop.permute.xlu0 %647 }
 0x11f   : > { %v952_v9 = vpack.c.bf16 %v638_v7, %v637_v8 }
 0x121   : > { %953 = vmatpush1.bf16.msra.mxu0 %v952_v9  ;;  %973 = vmatpush1.bf16.msra.mxu1 %v952_v9 }
 0x124   : > { %727 = vmatmul.mubr.f32.vlgmr.msra.gmra.mrb[20].mxu0 %v639_v10  ;;  %732 = vmatmul.mubr.f32.vlgmr.msra.gmra.mrb[0].mxu1 %v641_v11 }
 0x1f7   : > { %v728_v13 = vpop.f32.mrb[20].mxu0  ;;  %v733_v14 = vpop.f32.mrb[0].mxu1 }
 0x1f8   : > { %v729_v15 = vadd.f32 %v728_v13, %v648_v44  ;;  %v734_v16 = vadd.f32 %v733_v14, %v653_v12  ;;  %v730_v17 = vpop.f32.mrb[21].mxu0  ;;  %v735_v18 = vpop.f32.mrb[1].mxu1 }
 0x1fa   : > { %737 = vst [vmem:[%s239_s26] sm:$0xff] %v729_v15  ;;  %738 = vst [vmem:[%s239_s26 + $0x8] sm:$0xff] %v734_v16 }
 0x1fb   : > { %1065 = shalt.err (!%p1062_p7)
}
 0x1fc   : > { %s1066_s13 = scalar_lea.hbm %s1448_s8, 256  ;;  %s1070_s16 = scalar_lea.hbm %s1507_s5, 1024 }
 0x1fd   : > { %p1067_p9 = scmp.ne.s32.totalorder %s1448_s8, %s1066_s13  ;;  %p1071_p12 = scmp.lt.u32.totalorder %s1448_s8, %s1507_s5 }
 0x1fe   : > { %p1072_p13 = scmp.lt.u32.totalorder %s1070_s16, %s1066_s13  ;;  %p1074_p1 = scmp.lt.u32.totalorder %s1066_s13, %s1448_s8 }
 0x1ff   : > { %p1068_p10 = pnand %p1067_p9, %p1235_p3 }
 0x200   : > { %p1073_p0 = por %p1072_p13, %p1071_p12 }
 0x201   : > { %p1069_p11 = pneg %p1068_p10 }
 0x202   : > { %p1075_p2 = por %p1074_p1, %p1073_p0 }
 0x204   : > { %p1076_p4 = pnand %p1075_p2, %p1069_p11 }
 0x206   : > { %1079 = shalt.err (!%p1076_p4)
}
 0x207   : > { %s1151_s28 = smov 128   ;;  %s1152_s29 = smov 256  }
 0x208   : > { %s1153_s30 = smov 8  }
 0x209   : > { %974 = dma.vmem_to_hbm [thread:$0]  (%p1235_p3), %s1443_s27, 256, %s1448_s8, %s1450_s21, %s1151_s28, %s1152_s29, %s1153_s30  }
 0x20a PF: > { %p980_p5 = scmp.ge.s32.totalorder %s1146_s25, 2  ;;  %s769_s22 = sand.u32 1, %s1118_s18  }
 0x20b   : > { %s770_s9 = scalar_lea.sflag [#allocation3], %s769_s22 }
 0x20c   : > { %p977_p6 = pnand %p980_p5, %p1244_p8 }
 0x20e   : > { %1113 = dma.done.wait (!%p977_p6), %s770_s9, 256  }
 0x20f   : > { %1115 = vsyncadd (!%p977_p6), %s770_s9, 4294967040  ;;  %s18_s25 = sadd.s32 1, %s1146_s25   ;;  %s1514_s6 = sld [smem:[#allocation5_spill]] }
 0x210   : > { %p15_p7 = scmp.ge.s32.totalorder %s18_s25, 6   ;;  %s1515_s27 = sld [smem:[#allocation6_spill]] }
 0x211   : > { %s1516_s18 = smov %s1122_s19  ;;  %s1517_s19 = smov %s1126_s20 }
 0x212   : > { %s1518_s20 = smov %s1253_s11  ;;  %s1519_s21 = smov %s1138_s23 }
 0x213   : > { %s1520_s22 = smov %s1142_s24  ;;  %17 = sbr.rel (!%p15_p7) target bundleno = 5 (0x5), region = 75 }
 0x215   : > { %s1521_s23 = smov %s1514_s6 }
 0x216   : > { %s1522_s24 = smov %s1515_s27 }
 0x21a   :  { %775 = vsyncpa [#allocation3], 1 }
 0x21b   :  { %777 = vsyncpa [#allocation3 + $0x1], 1 }

</bundles_post_ra>
